<compile_context>
chip_gen: v7x
topology: tpu7x:2x2x1
jax: 0.10.0
libtpu: 0.0.40
codegen_flags: <defaults>
</compile_context>

<pallas_src>
import functools

import jax
import jax.numpy as jnp
from jax.experimental import pallas as pl
from jax.experimental.pallas import tpu as pltpu

IN_FEATURES = 784
HIDDEN = 128
OUT_FEATURES = 10
DEFAULT_BLOCK_M = 2048  # f32 input double-buffer ~12.3 MiB, fits 32 MiB scoped VMEM


def _round_up(x, m):
    return ((x + m - 1) // m) * m


def mlp_kernel(x_ref, w1_ref, b1_ref, w2_ref, b2_ref, o_ref, *, compute_dtype):
    # x_ref : (TM, 784)   f32  (cast to compute_dtype in-kernel)
    # w1_ref: (784, 128)  f32
    # b1_ref: (1, 128)    f32
    # w2_ref: (128, 10)   f32
    # b2_ref: (1, 10)     f32
    # o_ref : (TM, 10)    f32
    x = x_ref[...].astype(compute_dtype)
    w1 = w1_ref[...].astype(compute_dtype)
    h = jnp.dot(x, w1, preferred_element_type=jnp.float32)
    h = jnp.maximum(h + b1_ref[...], 0.0)
    # dropout: identity at inference
    h = h.astype(compute_dtype)
    w2 = w2_ref[...].astype(compute_dtype)
    out = jnp.dot(h, w2, preferred_element_type=jnp.float32)
    o_ref[...] = (out + b2_ref[...]).astype(o_ref.dtype)


@functools.partial(jax.jit, static_argnames=("block_m", "compute_dtype"))
def custom_model_forward(x_nchw, w1, b1, w2, b2,
                         block_m=DEFAULT_BLOCK_M,
                         compute_dtype=jnp.bfloat16):
    """Fused MLP forward. x_nchw: (N, C, H, W) with C*H*W == 784.

    Weights are stored transposed relative to torch: w1 (784, 128), w2 (128, 10),
    so the kernel computes x @ W + b directly on the MXU.  All operands are
    passed in f32; any bf16 casting happens inside the kernel (HBM reads stay f32
    with no extra wrapper cast pass).
    """
    n = x_nchw.shape[0]
    x = x_nchw.reshape(n, -1)  # torch.flatten(x, 1); no cast — kernel casts in VMEM
    assert x.shape[1] == IN_FEATURES

    b1_2d = b1.reshape(1, HIDDEN).astype(jnp.float32)
    b2_2d = b2.reshape(1, OUT_FEATURES).astype(jnp.float32)
    w1_f32 = w1.astype(jnp.float32)
    w2_f32 = w2.astype(jnp.float32)

    # Batch tile: multiple of 16 (native bf16 sublane packing), capped at
    # block_m, and sized so the grid has >= 2 steps when possible so the
    # "parallel" batch axis can be sharded across both v7x TensorCores.
    # Partial tail blocks are handled by Pallas (padded reads / masked writes).
    tm = min(block_m, max(16, _round_up(pl.cdiv(n, 2), 16)))
    grid = (pl.cdiv(n, tm),)

    cost = pl.CostEstimate(
        flops=2 * n * (IN_FEATURES * HIDDEN + HIDDEN * OUT_FEATURES),
        transcendentals=0,
        bytes_accessed=(n * IN_FEATURES * 4            # x, read f32
                        + IN_FEATURES * HIDDEN * 4     # w1
                        + HIDDEN * 4                   # b1
                        + HIDDEN * OUT_FEATURES * 4    # w2
                        + OUT_FEATURES * 4             # b2
                        + n * OUT_FEATURES * 4),       # output, written f32
    )

    kernel = functools.partial(mlp_kernel, compute_dtype=compute_dtype)

    return pl.pallas_call(
        kernel,
        out_shape=jax.ShapeDtypeStruct((n, OUT_FEATURES), jnp.float32),
        grid_spec=pltpu.PrefetchScalarGridSpec(
            num_scalar_prefetch=0,
            grid=grid,
            in_specs=[
                pl.BlockSpec((tm, IN_FEATURES), lambda i: (i, 0)),
                # weights/biases: constant index_map -> stay resident in VMEM
                pl.BlockSpec((IN_FEATURES, HIDDEN), lambda i: (0, 0)),
                pl.BlockSpec((1, HIDDEN), lambda i: (0, 0)),
                pl.BlockSpec((HIDDEN, OUT_FEATURES), lambda i: (0, 0)),
                pl.BlockSpec((1, OUT_FEATURES), lambda i: (0, 0)),
            ],
            out_specs=pl.BlockSpec((tm, OUT_FEATURES), lambda i: (i, 0)),
        ),
        compiler_params=pltpu.CompilerParams(
            dimension_semantics=("parallel",),
            vmem_limit_bytes=32 << 20,  # keep 2048x784xf32 double-buffer legal on v5e
        ),
        cost_estimate=cost,
    )(x, w1_f32, b1_2d, w2_f32, b2_2d)


def init_params(key, layer_size=HIDDEN):
    """Deterministic init mimicking nn.Linear default (uniform +/- 1/sqrt(fan_in))."""
    k1, k2, k3, k4 = jax.random.split(key, 4)
    bound1 = 1.0 / jnp.sqrt(IN_FEATURES)
    bound2 = 1.0 / jnp.sqrt(layer_size)
    w1 = jax.random.uniform(k1, (IN_FEATURES, layer_size), jnp.float32,
                            -bound1, bound1)
    b1 = jax.random.uniform(k2, (layer_size,), jnp.float32, -bound1, bound1)
    w2 = jax.random.uniform(k3, (layer_size, OUT_FEATURES), jnp.float32,
                            -bound2, bound2)
    b2 = jax.random.uniform(k4, (OUT_FEATURES,), jnp.float32, -bound2, bound2)
    return w1, b1, w2, b2


def _reference(x_nchw, w1, b1, w2, b2, compute_dtype):
    n = x_nchw.shape[0]
    x = x_nchw.reshape(n, -1).astype(compute_dtype)
    h = jnp.dot(x, w1.astype(compute_dtype),
                preferred_element_type=jnp.float32) + b1
    h = jnp.maximum(h, 0.0).astype(compute_dtype)
    return jnp.dot(h, w2.astype(compute_dtype),
                   preferred_element_type=jnp.float32) + b2


if __name__ == "__main__":
    key = jax.random.PRNGKey(0)
    k_x, k_p, k_x2 = jax.random.split(key, 3)

    # MNIST-like small batch: (N=8, C=1, H=28, W=28) -> 784 features
    x = jax.random.normal(k_x, (8, 1, 28, 28), dtype=jnp.float32)
    w1, b1, w2, b2 = init_params(k_p)

    # Default (bf16 compute, f32 accumulation) path.
    out_bf16 = custom_model_forward(x, w1, b1, w2, b2)
    out_bf16 = jax.block_until_ready(out_bf16)
    assert out_bf16.shape == (8, OUT_FEATURES)
    ref_bf16 = _reference(x, w1, b1, w2, b2, jnp.bfloat16)
    assert jnp.allclose(out_bf16, ref_bf16, atol=1e-2, rtol=1e-2)

    # f32 path: tight check of kernel structure against a pure-JAX reference.
    out_f32 = custom_model_forward(x, w1, b1, w2, b2,
                                   compute_dtype=jnp.float32)
    out_f32 = jax.block_until_ready(out_f32)
    ref_f32 = _reference(x, w1, b1, w2, b2, jnp.float32)
    assert jnp.allclose(out_f32, ref_f32, atol=1e-4, rtol=1e-4)

    # Multi-tile path with a partial tail block (N=50, block_m=32 -> grid=2).
    x_big = jax.random.normal(k_x2, (50, 1, 28, 28), dtype=jnp.float32)
    out_big = custom_model_forward(x_big, w1, b1, w2, b2, block_m=32,
                                   compute_dtype=jnp.float32)
    out_big = jax.block_until_ready(out_big)
    ref_big = _reference(x_big, w1, b1, w2, b2, jnp.float32)
    assert out_big.shape == (50, OUT_FEATURES)
    assert jnp.allclose(out_big, ref_big, atol=1e-4, rtol=1e-4)

    print("KERNEL_OK")
</pallas_src>

<mosaic_0001>
module attributes {stable_mosaic.version = 11 : i64} {
  func.func @mlp_kernel(%arg0: i32, %arg1: memref<16x784xf32, #tpu.memory_space<vmem>>, %arg2: memref<784x128xf32, #tpu.memory_space<vmem>>, %arg3: memref<1x128xf32, #tpu.memory_space<vmem>>, %arg4: memref<128x10xf32, #tpu.memory_space<vmem>>, %arg5: memref<1x10xf32, #tpu.memory_space<vmem>>, %arg6: memref<16x10xf32, #tpu.memory_space<vmem>>) attributes {dimension_semantics = [#tpu.dimension_semantics<parallel>], iteration_bounds = array<i64: 1>, scalar_prefetch = 0 : i64, scratch_operands = 0 : i64, tpu.core_type = #tpu.core_type<tc>, window_params = [{transform_indices = @transform_0, window_bounds = array<i64: 16, 784>}, {pipeline_mode = #tpu.pipeline_mode<synchronous>, transform_indices = @transform_1, window_bounds = array<i64: 784, 128>}, {pipeline_mode = #tpu.pipeline_mode<synchronous>, transform_indices = @transform_2, window_bounds = array<i64: 1, 128>}, {pipeline_mode = #tpu.pipeline_mode<synchronous>, transform_indices = @transform_3, window_bounds = array<i64: 128, 10>}, {pipeline_mode = #tpu.pipeline_mode<synchronous>, transform_indices = @transform_4, window_bounds = array<i64: 1, 10>}, {transform_indices = @transform_5, window_bounds = array<i64: 16, 10>}]} {
    %c0 = arith.constant 0 : index
    %c0_0 = arith.constant 0 : index
    %0 = vector.load %arg1[%c0, %c0_0] : memref<16x784xf32, #tpu.memory_space<vmem>>, vector<16x784xf32>
    %1 = arith.truncf %0 : vector<16x784xf32> to vector<16x784xbf16>
    %c0_1 = arith.constant 0 : index
    %c0_2 = arith.constant 0 : index
    %2 = vector.load %arg2[%c0_1, %c0_2] : memref<784x128xf32, #tpu.memory_space<vmem>>, vector<784x128xf32>
    %3 = arith.truncf %2 : vector<784x128xf32> to vector<784x128xbf16>
    %cst = arith.constant dense<0.000000e+00> : vector<16x128xf32>
    %4 = tpu.matmul %1, %3, %cst {dimension_numbers = #tpu.dot_dimension_numbers<[1], [0], [0], [1], [0, 0, 1, 1], [], []>} : vector<16x784xbf16>, vector<784x128xbf16>, vector<16x128xf32> -> vector<16x128xf32>
    %c0_3 = arith.constant 0 : index
    %c0_4 = arith.constant 0 : index
    %5 = vector.load %arg3[%c0_3, %c0_4] : memref<1x128xf32, #tpu.memory_space<vmem>>, vector<1x128xf32>
    %6 = vector.broadcast %5 : vector<1x128xf32> to vector<16x128xf32>
    %7 = arith.addf %4, %6 : vector<16x128xf32>
    %cst_5 = arith.constant 0.000000e+00 : f32
    %8 = vector.broadcast %cst_5 : f32 to vector<16x128xf32>
    %9 = arith.maximumf %7, %8 : vector<16x128xf32>
    %10 = arith.truncf %9 : vector<16x128xf32> to vector<16x128xbf16>
    %c0_6 = arith.constant 0 : index
    %c0_7 = arith.constant 0 : index
    %11 = vector.load %arg4[%c0_6, %c0_7] : memref<128x10xf32, #tpu.memory_space<vmem>>, vector<128x10xf32>
    %12 = arith.truncf %11 : vector<128x10xf32> to vector<128x10xbf16>
    %cst_8 = arith.constant dense<0.000000e+00> : vector<16x10xf32>
    %13 = tpu.matmul %10, %12, %cst_8 {dimension_numbers = #tpu.dot_dimension_numbers<[1], [0], [0], [1], [0, 0, 1, 1], [], []>} : vector<16x128xbf16>, vector<128x10xbf16>, vector<16x10xf32> -> vector<16x10xf32>
    %c0_9 = arith.constant 0 : index
    %c0_10 = arith.constant 0 : index
    %14 = vector.load %arg5[%c0_9, %c0_10] : memref<1x10xf32, #tpu.memory_space<vmem>>, vector<1x10xf32>
    %15 = vector.broadcast %14 : vector<1x10xf32> to vector<16x10xf32>
    %16 = arith.addf %13, %15 : vector<16x10xf32>
    %c0_11 = arith.constant 0 : index
    %c0_12 = arith.constant 0 : index
    %17 = vector.load %arg6[%c0_11, %c0_12] : memref<16x10xf32, #tpu.memory_space<vmem>>, vector<16x10xf32>
    tpu.vector_store %arg6[%c0_11, %c0_12], %16 {strides = array<i32>} : memref<16x10xf32, #tpu.memory_space<vmem>>, vector<16x10xf32>,
    return
  }
  func.func @transform_0(%arg0: i32) -> (i32, i32) {
    %c0_i32 = arith.constant 0 : i32
    %c0_i32_0 = arith.constant 0 : i32
    return %arg0, %c0_i32 : i32, i32
  }
  func.func @transform_1(%arg0: i32) -> (i32, i32) {
    %c0_i32 = arith.constant 0 : i32
    %c0_i32_0 = arith.constant 0 : i32
    %c0_i32_1 = arith.constant 0 : i32
    return %c0_i32, %c0_i32_0 : i32, i32
  }
  func.func @transform_2(%arg0: i32) -> (i32, i32) {
    %c0_i32 = arith.constant 0 : i32
    %c0_i32_0 = arith.constant 0 : i32
    %c0_i32_1 = arith.constant 0 : i32
    return %c0_i32, %c0_i32_0 : i32, i32
  }
  func.func @transform_3(%arg0: i32) -> (i32, i32) {
    %c0_i32 = arith.constant 0 : i32
    %c0_i32_0 = arith.constant 0 : i32
    %c0_i32_1 = arith.constant 0 : i32
    return %c0_i32, %c0_i32_0 : i32, i32
  }
  func.func @transform_4(%arg0: i32) -> (i32, i32) {
    %c0_i32 = arith.constant 0 : i32
    %c0_i32_0 = arith.constant 0 : i32
    %c0_i32_1 = arith.constant 0 : i32
    return %c0_i32, %c0_i32_0 : i32, i32
  }
  func.func @transform_5(%arg0: i32) -> (i32, i32) {
    %c0_i32 = arith.constant 0 : i32
    %c0_i32_0 = arith.constant 0 : i32
    return %arg0, %c0_i32 : i32, i32
  }
}

</mosaic_0001>

<bundles_post_ra>
// kernel: custom_model_forward.1
= control target key start
LH: loop header
LB: loop body
LE: loop exit
PB: predicated region body
PF: predicated region fallthrough
CT: control target
= control target key end

     0   :  { %10 = vsyncpa [#allocation3], 0  ;;  %vm595_vm0 = vmmov 0   ;;  %vm197_vm1 = vcmask 130048   ;;  %vm440_vm2 = vcmask 80896   ;;  %s1044_s0 = inlined_call_operand.vmem [shape: f32[8,784], index: 0, kind: input, shape index: {}]   ;;  %s1045_s1 = inlined_call_operand.vmem [shape: f32[784,128], index: 1, kind: input, shape index: {}]   ;;  %s1046_s2 = inlined_call_operand.vmem [shape: f32[1,128], index: 2, kind: input, shape index: {}]   ;;  %s1047_s3 = inlined_call_operand.vmem [shape: f32[128,10], index: 3, kind: input, shape index: {}]   ;;  %s1048_s4 = inlined_call_operand.vmem [shape: f32[1,10], index: 4, kind: input, shape index: {}]   ;;  %s1049_s5 = inlined_call_operand.hbm [shape: f32[8,10], index: 5, kind: output, shape index: {}]  }
   0x1   :  { %v59_v0 = vld [vmem:[%s1045_s1 + $0x80] sm:$0xff]  ;;  %v60_v1 = vld [vmem:[%s1045_s1 + $0x88] sm:$0xff]  ;;  %v61_v12 = vld [vmem:[%s1045_s1 + $0x90] sm:$0xff] }
   0x2   :  { %v149_v2 = vpack.c.bf16 %v60_v1, %v59_v0  ;;  %v43_v3 = vld [vmem:[%s1045_s1] sm:$0xff]  ;;  %v44_v4 = vld [vmem:[%s1045_s1 + $0x8] sm:$0xff]  ;;  %v62_v13 = vld [vmem:[%s1045_s1 + $0x98] sm:$0xff] }
   0x3   :  { %v91_v5 = vld [vmem:[%s1045_s1 + $0x180] sm:$0xff]  ;;  %v141_v6 = vpack.c.bf16 %v44_v4, %v43_v3  ;;  %v92_v7 = vld [vmem:[%s1045_s1 + $0x188] sm:$0xff]  ;;  %v45_v14 = vld [vmem:[%s1045_s1 + $0x10] sm:$0xff]  ;;  %v150_v15 = vpack.c.bf16 %v62_v13, %v61_v12 }
   0x4   :  { %v75_v8 = vld [vmem:[%s1045_s1 + $0x100] sm:$0xff]  ;;  %v76_v9 = vld [vmem:[%s1045_s1 + $0x108] sm:$0xff]  ;;  %462 = vmatprep.subr.bf16.mxu0 %v149_v2  ;;  %v165_v10 = vpack.c.bf16 %v92_v7, %v91_v5  ;;  %v46_v16 = vld [vmem:[%s1045_s1 + $0x18] sm:$0xff] }
   0x5   :  { %v157_v11 = vpack.c.bf16 %v76_v9, %v75_v8  ;;  %463 = vmatpush3.bf16.msra.mxu0 %v141_v6  ;;  %v93_v17 = vld [vmem:[%s1045_s1 + $0x190] sm:$0xff]  ;;  %v94_v18 = vld [vmem:[%s1045_s1 + $0x198] sm:$0xff]  ;;  %v142_v19 = vpack.c.bf16 %v46_v16, %v45_v14  ;;  %v63_v23 = vld [vmem:[%s1045_s1 + $0xa0] sm:$0xff] }
   0x6   :  { %484 = vmatprep.subr.bf16.mxu1 %v165_v10  ;;  %v166_v20 = vpack.c.bf16 %v94_v18, %v93_v17  ;;  %v77_v21 = vld [vmem:[%s1045_s1 + $0x110] sm:$0xff]  ;;  %v78_v22 = vld [vmem:[%s1045_s1 + $0x118] sm:$0xff]  ;;  %464 = vmatprep.subr.bf16.mxu0 %v150_v15  ;;  %v64_v25 = vld [vmem:[%s1045_s1 + $0xa8] sm:$0xff] }
   0x7   :  { %485 = vmatpush3.bf16.msra.mxu1 %v157_v11  ;;  %v158_v24 = vpack.c.bf16 %v78_v22, %v77_v21  ;;  %v47_v26 = vld [vmem:[%s1045_s1 + $0x20] sm:$0xff]  ;;  %v48_v27 = vld [vmem:[%s1045_s1 + $0x28] sm:$0xff]  ;;  %v151_v28 = vpack.c.bf16 %v64_v25, %v63_v23  ;;  %v65_v35 = vld [vmem:[%s1045_s1 + $0xb0] sm:$0xff] }
   0x8   :  { %486 = vmatprep.subr.bf16.mxu1 %v166_v20  ;;  %v95_v29 = vld [vmem:[%s1045_s1 + $0x1a0] sm:$0xff]  ;;  %v96_v30 = vld [vmem:[%s1045_s1 + $0x1a8] sm:$0xff]  ;;  %v143_v32 = vpack.c.bf16 %v48_v27, %v47_v26  ;;  %v66_v36 = vld [vmem:[%s1045_s1 + $0xb8] sm:$0xff] }
   0x9   :  { %v79_v31 = vld [vmem:[%s1045_s1 + $0x120] sm:$0xff]  ;;  %465 = vmatpush3.bf16.msra.mxu0 %v142_v19  ;;  %v167_v33 = vpack.c.bf16 %v96_v30, %v95_v29  ;;  %v80_v34 = vld [vmem:[%s1045_s1 + $0x128] sm:$0xff]  ;;  %v152_v37 = vpack.c.bf16 %v66_v36, %v65_v35  ;;  %v49_v38 = vld [vmem:[%s1045_s1 + $0x30] sm:$0xff] }
   0xa   :  { %466 = vmatprep.subr.bf16.mxu0 %v151_v28  ;;  %v50_v39 = vld [vmem:[%s1045_s1 + $0x38] sm:$0xff]  ;;  %v97_v40 = vld [vmem:[%s1045_s1 + $0x1b0] sm:$0xff]  ;;  %v159_v41 = vpack.c.bf16 %v80_v34, %v79_v31  ;;  %v67_v46 = vld [vmem:[%s1045_s1 + $0xc0] sm:$0xff] }
   0xb   :  { %487 = vmatpush3.bf16.msra.mxu1 %v158_v24  ;;  %v98_v42 = vld [vmem:[%s1045_s1 + $0x1b8] sm:$0xff]  ;;  %v81_v43 = vld [vmem:[%s1045_s1 + $0x130] sm:$0xff]  ;;  %v68_v47 = vld [vmem:[%s1045_s1 + $0xc8] sm:$0xff]  ;;  %v144_v48 = vpack.c.bf16 %v50_v39, %v49_v38 }
   0xc   :  { %488 = vmatprep.subr.bf16.mxu1 %v167_v33  ;;  %v168_v44 = vpack.c.bf16 %v98_v42, %v97_v40  ;;  %v82_v45 = vld [vmem:[%s1045_s1 + $0x138] sm:$0xff]  ;;  %v99_v49 = vld [vmem:[%s1045_s1 + $0x1c0] sm:$0xff]  ;;  %v100_v50 = vld [vmem:[%s1045_s1 + $0x1c8] sm:$0xff]  ;;  %v153_v51 = vpack.c.bf16 %v68_v47, %v67_v46 }
   0xd   :  { %467 = vmatpush3.bf16.msra.mxu0 %v143_v32  ;;  %v51_v52 = vld [vmem:[%s1045_s1 + $0x40] sm:$0xff]  ;;  %v52_v53 = vld [vmem:[%s1045_s1 + $0x48] sm:$0xff]  ;;  %v160_v54 = vpack.c.bf16 %v82_v45, %v81_v43  ;;  %v69_v55 = vld [vmem:[%s1045_s1 + $0xd0] sm:$0xff]  ;;  %v169_v57 = vpack.c.bf16 %v100_v50, %v99_v49 }
   0xe   :  { %468 = vmatprep.subr.bf16.mxu0 %v152_v37  ;;  %v70_v56 = vld [vmem:[%s1045_s1 + $0xd8] sm:$0xff]  ;;  %v83_v58 = vld [vmem:[%s1045_s1 + $0x140] sm:$0xff]  ;;  %v84_v59 = vld [vmem:[%s1045_s1 + $0x148] sm:$0xff]  ;;  %v145_v60 = vpack.c.bf16 %v52_v53, %v51_v52 }
   0xf   :  { %489 = vmatpush3.bf16.msra.mxu1 %v159_v41  ;;  %v101_v61 = vld [vmem:[%s1045_s1 + $0x1d0] sm:$0xff]  ;;  %v102_v62 = vld [vmem:[%s1045_s1 + $0x1d8] sm:$0xff]  ;;  %v154_v63 = vpack.c.bf16 %v70_v56, %v69_v55  ;;  %v161_v2 = vpack.c.bf16 %v84_v59, %v83_v58  ;;  %v71_v3 = vld [vmem:[%s1045_s1 + $0xe0] sm:$0xff] }
  0x10   :  { %490 = vmatprep.subr.bf16.mxu1 %v168_v44  ;;  %v53_v0 = vld [vmem:[%s1045_s1 + $0x50] sm:$0xff]  ;;  %v54_v1 = vld [vmem:[%s1045_s1 + $0x58] sm:$0xff]  ;;  %v72_v4 = vld [vmem:[%s1045_s1 + $0xe8] sm:$0xff]  ;;  %v170_v5 = vpack.c.bf16 %v102_v62, %v101_v61 }
  0x11   :  { %469 = vmatpush3.bf16.msra.mxu0 %v144_v48  ;;  %v85_v6 = vld [vmem:[%s1045_s1 + $0x150] sm:$0xff]  ;;  %v86_v7 = vld [vmem:[%s1045_s1 + $0x158] sm:$0xff]  ;;  %v146_v8 = vpack.c.bf16 %v54_v1, %v53_v0  ;;  %v55_v9 = vld [vmem:[%s1045_s1 + $0x60] sm:$0xff]  ;;  %v155_v12 = vpack.c.bf16 %v72_v4, %v71_v3 }
  0x12   :  { %470 = vmatprep.subr.bf16.mxu0 %v153_v51  ;;  %v103_v10 = vld [vmem:[%s1045_s1 + $0x1e0] sm:$0xff]  ;;  %v104_v11 = vld [vmem:[%s1045_s1 + $0x1e8] sm:$0xff]  ;;  %v162_v16 = vpack.c.bf16 %v86_v7, %v85_v6  ;;  %v73_v17 = vld [vmem:[%s1045_s1 + $0xf0] sm:$0xff] }
  0x13   :  { %491 = vmatpush3.bf16.msra.mxu1 %v160_v54  ;;  %v56_v13 = vld [vmem:[%s1045_s1 + $0x68] sm:$0xff]  ;;  %v30_v15 = vld [vmem:[%s1044_s0 + $0x40] sm:$0xff]  ;;  %v74_v18 = vld [vmem:[%s1045_s1 + $0xf8] sm:$0xff]  ;;  %v171_v20 = vpack.c.bf16 %v104_v11, %v103_v10 }
  0x14   :  { %492 = vmatprep.subr.bf16.mxu1 %v169_v57  ;;  %v23_v14 = vld [vmem:[%s1044_s0 + $0x8] sm:$0xff]  ;;  %v87_v21 = vld [vmem:[%s1045_s1 + $0x160] sm:$0xff]  ;;  %v25_v23 = vld [vmem:[%s1044_s0 + $0x18] sm:$0xff]  ;;  %v147_v24 = vpack.c.bf16 %v56_v13, %v55_v9  ;;  %v156_v28 = vpack.c.bf16 %v74_v18, %v73_v17  ;;  %v594_v57 = vmov 0.0  }
  0x15   :  { %471 = vmatpush3.bf16.msra.mxu0 %v145_v60  ;;  %v37_v19 = vpack.c.bf16 %v30_v15, %v23_v14  ;;  %v88_v22 = vld [vmem:[%s1045_s1 + $0x168] sm:$0xff]  ;;  %v105_v25 = vld [vmem:[%s1045_s1 + $0x1f0] sm:$0xff]  ;;  %v106_v26 = vld [vmem:[%s1045_s1 + $0x1f8] sm:$0xff] }
  0x16   :  { %472 = vmatprep.subr.bf16.mxu0 %v154_v63  ;;  %v32_v27 = vld [vmem:[%s1044_s0 + $0x50] sm:$0xff]  ;;  %v58_v30 = vld [vmem:[%s1045_s1 + $0x78] sm:$0xff]  ;;  %v163_v32 = vpack.c.bf16 %v88_v22, %v87_v21  ;;  %v123_v33 = vld [vmem:[%s1045_s1 + $0x280] sm:$0xff]  ;;  %v172_v35 = vpack.c.bf16 %v106_v26, %v105_v25 }
  0x17   :  { %493 = vmatpush3.bf16.msra.mxu1 %v161_v2  ;;  %233 = vmatprep.mubr.bf16.mxu0 %v37_v19  ;;  %v57_v29 = vld [vmem:[%s1045_s1 + $0x70] sm:$0xff]  ;;  %v39_v31 = vpack.c.bf16 %v32_v27, %v25_v23  ;;  %v124_v34 = vld [vmem:[%s1045_s1 + $0x288] sm:$0xff]  ;;  %v90_v37 = vld [vmem:[%s1045_s1 + $0x178] sm:$0xff] }
  0x18   :  { %494 = vmatprep.subr.bf16.mxu1 %v170_v5  ;;  %v89_v36 = vld [vmem:[%s1045_s1 + $0x170] sm:$0xff]  ;;  %v148_v38 = vpack.c.bf16 %v58_v30, %v57_v29  ;;  %v22_v39 = vld [vmem:[%s1044_s0] sm:$0xff]  ;;  %v29_v40 = vld [vmem:[%s1044_s0 + $0x38] sm:$0xff]  ;;  %v181_v41 = vpack.c.bf16 %v124_v34, %v123_v33 }
  0x19   :  { %473 = vmatpush3.bf16.msra.mxu0 %v146_v8  ;;  %274 = vmatprep.mubr.bf16.mxu1 %v39_v31  ;;  %v107_v42 = vld [vmem:[%s1045_s1 + $0x200] sm:$0xff]  ;;  %v108_v43 = vld [vmem:[%s1045_s1 + $0x208] sm:$0xff]  ;;  %v24_v44 = vld [vmem:[%s1044_s0 + $0x10] sm:$0xff]  ;;  %v164_v45 = vpack.c.bf16 %v90_v37, %v89_v36  ;;  %v36_v49 = vpack.c.bf16 %v29_v40, %v22_v39 }
  0x1a   :  { %474 = vmatprep.subr.bf16.mxu0 %v155_v12  ;;  %v31_v46 = vld [vmem:[%s1044_s0 + $0x48] sm:$0xff]  ;;  %v125_v47 = vld [vmem:[%s1045_s1 + $0x290] sm:$0xff]  ;;  %v126_v48 = vld [vmem:[%s1045_s1 + $0x298] sm:$0xff]  ;;  %v173_v50 = vpack.c.bf16 %v108_v43, %v107_v42 }
  0x1b   :  { %495 = vmatpush3.bf16.msra.mxu1 %v162_v16  ;;  %v38_v51 = vpack.c.bf16 %v31_v46, %v24_v44  ;;  %v182_v52 = vpack.c.bf16 %v126_v48, %v125_v47  ;;  %v109_v53 = vld [vmem:[%s1045_s1 + $0x210] sm:$0xff]  ;;  %v110_v54 = vld [vmem:[%s1045_s1 + $0x218] sm:$0xff]  ;;  %v127_v55 = vld [vmem:[%s1045_s1 + $0x2a0] sm:$0xff] }
  0x1c   :  { %496 = vmatprep.subr.bf16.mxu1 %v171_v20  ;;  %v128_v56 = vld [vmem:[%s1045_s1 + $0x2a8] sm:$0xff]  ;;  %v139_v58 = vld [vmem:[%s1045_s1 + $0x300] sm:$0xff]  ;;  %v174_v61 = vpack.c.bf16 %v110_v54, %v109_v53  ;;  %v129_v3 = vld [vmem:[%s1045_s1 + $0x2b0] sm:$0xff] }
  0x1d   :  { %475 = vmatpush3.bf16.msra.mxu0 %v147_v24  ;;  %v140_v59 = vld [vmem:[%s1045_s1 + $0x308] sm:$0xff]  ;;  %v34_v63 = vld [vmem:[%s1044_s0 + $0x60] sm:$0xff]  ;;  %v183_v0 = vpack.c.bf16 %v128_v56, %v127_v55  ;;  %v130_v5 = vld [vmem:[%s1045_s1 + $0x2b8] sm:$0xff] }
  0x1e   :  { %476 = vmatprep.subr.bf16.mxu0 %v156_v28  ;;  %v27_v60 = vld [vmem:[%s1044_s0 + $0x28] sm:$0xff]  ;;  %v189_v62 = vpack.c.bf16 %v140_v59, %v139_v58  ;;  %v111_v1 = vld [vmem:[%s1045_s1 + $0x220] sm:$0xff]  ;;  %v28_v6 = vld [vmem:[%s1044_s0 + $0x30] sm:$0xff]  ;;  %v184_v9 = vpack.c.bf16 %v130_v5, %v129_v3 }
  0x1f   :  { %497 = vmatpush3.bf16.msra.mxu1 %v163_v32  ;;  %v112_v2 = vld [vmem:[%s1045_s1 + $0x228] sm:$0xff]  ;;  %v41_v4 = vpack.c.bf16 %v34_v63, %v27_v60  ;;  %v113_v10 = vld [vmem:[%s1045_s1 + $0x230] sm:$0xff]  ;;  %v114_v11 = vld [vmem:[%s1045_s1 + $0x238] sm:$0xff] }
  0x20   :  { %498 = vmatprep.subr.bf16.mxu1 %v172_v35  ;;  %v35_v7 = vld [vmem:[%s1044_s0 + $0x68] sm:$0xff]  ;;  %v175_v8 = vpack.c.bf16 %v112_v2, %v111_v1  ;;  %v131_v13 = vld [vmem:[%s1045_s1 + $0x2c0] sm:$0xff]  ;;  %v176_v15 = vpack.c.bf16 %v114_v11, %v113_v10  ;;  %v133_v19 = vld [vmem:[%s1045_s1 + $0x2d0] sm:$0xff] }
  0x21   :  { %477 = vmatpush3.bf16.msra.mxu0 %v148_v38  ;;  %v42_v12 = vpack.c.bf16 %v35_v7, %v28_v6  ;;  %v132_v14 = vld [vmem:[%s1045_s1 + $0x2c8] sm:$0xff]  ;;  %v115_v17 = vld [vmem:[%s1045_s1 + $0x240] sm:$0xff]  ;;  %v134_v20 = vld [vmem:[%s1045_s1 + $0x2d8] sm:$0xff] }
  0x22   :  { %506 = vmatprep.subr.bf16.mxu0 %v181_v41  ;;  %v185_v16 = vpack.c.bf16 %v132_v14, %v131_v13  ;;  %v116_v18 = vld [vmem:[%s1045_s1 + $0x248] sm:$0xff]  ;;  %v186_v22 = vpack.c.bf16 %v134_v20, %v133_v19  ;;  %v117_v23 = vld [vmem:[%s1045_s1 + $0x250] sm:$0xff]  ;;  %v118_v24 = vld [vmem:[%s1045_s1 + $0x258] sm:$0xff] }
  0x23   :  { %499 = vmatpush3.bf16.msra.mxu1 %v164_v45  ;;  %v177_v21 = vpack.c.bf16 %v116_v18, %v115_v17  ;;  %v135_v25 = vld [vmem:[%s1045_s1 + $0x2e0] sm:$0xff]  ;;  %v136_v26 = vld [vmem:[%s1045_s1 + $0x2e8] sm:$0xff]  ;;  %v178_v27 = vpack.c.bf16 %v118_v24, %v117_v23  ;;  %v137_v31 = vld [vmem:[%s1045_s1 + $0x2f0] sm:$0xff] }
  0x24   :  { %234 = vmatmul.mubr.bf16.vlgmr.msra.gmra.mrb[0].mxu0 %v36_v49  ;;  %539 = vmatprep.subr.bf16.mxu1 %v594_v57  ;;  %v187_v28 = vpack.c.bf16 %v136_v26, %v135_v25  ;;  %v119_v29 = vld [vmem:[%s1045_s1 + $0x260] sm:$0xff]  ;;  %v120_v30 = vld [vmem:[%s1045_s1 + $0x268] sm:$0xff]  ;;  %v138_v32 = vld [vmem:[%s1045_s1 + $0x2f8] sm:$0xff] }
  0x25   :  { %507 = vmatpush3.bf16.msra.mxu0 %v173_v50  ;;  %315 = vmatprep.mubr.bf16.mxu0 %v41_v4  ;;  %v179_v33 = vpack.c.bf16 %v120_v30, %v119_v29  ;;  %v188_v34 = vpack.c.bf16 %v138_v32, %v137_v31  ;;  %v121_v35 = vld [vmem:[%s1045_s1 + $0x270] sm:$0xff]  ;;  %v122_v36 = vld [vmem:[%s1045_s1 + $0x278] sm:$0xff]  ;;  %v26_v38 = vld [vmem:[%s1044_s0 + $0x20] sm:$0xff] }
  0x26   :  { %275 = vmatmul.mubr.bf16.vlgmr.msra.gmra.mrb[0].mxu1 %v38_v51  ;;  %508 = vmatprep.subr.bf16.mxu0 %v182_v52  ;;  %v180_v37 = vpack.c.bf16 %v122_v36, %v121_v35  ;;  %v33_v39 = vld [vmem:[%s1044_s0 + $0x58] sm:$0xff]  ;;  %v368_v41 = vld [vmem:[%s1047_s3] sm:$0xff]  ;;  %v369_v42 = vld [vmem:[%s1047_s3 + $0x8] sm:$0xff] }
  0x27   :  { %540 = vmatpush3.bf16.msra.mxu1 %v189_v62  ;;  %541 = vmatprep.mubr.msk.bf16.mxu1 %vm595_vm0, %v594_v57  ;;  %v40_v40 = vpack.c.bf16 %v33_v39, %v26_v38  ;;  %v370_v43 = vld [vmem:[%s1047_s3 + $0x10] sm:$0xff]  ;;  %v384_v44 = vpack.c.bf16 %v369_v42, %v368_v41  ;;  %v371_v45 = vld [vmem:[%s1047_s3 + $0x18] sm:$0xff]  ;;  %v372_v47 = vld [vmem:[%s1047_s3 + $0x20] sm:$0xff] }
  0x28   :  { %545 = vmatprep.subr.bf16.mxu1 %v594_v57  ;;  %v385_v46 = vpack.c.bf16 %v371_v45, %v370_v43  ;;  %v373_v48 = vld [vmem:[%s1047_s3 + $0x28] sm:$0xff]  ;;  %v374_v50 = vld [vmem:[%s1047_s3 + $0x30] sm:$0xff]  ;;  %v375_v51 = vld [vmem:[%s1047_s3 + $0x38] sm:$0xff] }
  0x29   :  { %509 = vmatpush3.bf16.msra.mxu0 %v174_v61  ;;  %v386_v49 = vpack.c.bf16 %v373_v48, %v372_v47  ;;  %v387_v52 = vpack.c.bf16 %v375_v51, %v374_v50  ;;  %v376_v53 = vld [vmem:[%s1047_s3 + $0x40] sm:$0xff]  ;;  %v377_v54 = vld [vmem:[%s1047_s3 + $0x48] sm:$0xff]  ;;  %v378_v56 = vld [vmem:[%s1047_s3 + $0x50] sm:$0xff] }
  0x2a   :  { %510 = vmatprep.subr.bf16.mxu0 %v183_v0  ;;  %v388_v55 = vpack.c.bf16 %v377_v54, %v376_v53  ;;  %v379_v58 = vld [vmem:[%s1047_s3 + $0x58] sm:$0xff]  ;;  %v380_v60 = vld [vmem:[%s1047_s3 + $0x60] sm:$0xff]  ;;  %v381_v61 = vld [vmem:[%s1047_s3 + $0x68] sm:$0xff] }
  0x2b   :  { %v389_v59 = vpack.c.bf16 %v379_v58, %v378_v56  ;;  %v390_v62 = vpack.c.bf16 %v381_v61, %v380_v60  ;;  %v382_v63 = vld [vmem:[%s1047_s3 + $0x70] sm:$0xff]  ;;  %v383_v0 = vld [vmem:[%s1047_s3 + $0x78] sm:$0xff]  ;;  %v459_v3 = vld [vmem:[%s1046_s2] ss:$0 sm:$0xff] }
  0x2c   :  { %v391_v1 = vpack.c.bf16 %v383_v0, %v382_v63  ;;  %v461_v35 = vld [vmem:[%s1048_s4] ss:$0 sm:$0xff] }
  0x2d   :  { %511 = vmatpush3.bf16.msra.mxu0 %v175_v8 }
  0x2e   :  { %512 = vmatprep.subr.bf16.mxu0 %v184_v9  ;;  %542 = vmatmul.mubr.msk.bf16.vlgmr.msra.gmra.mrb[4].mxu1 %vm197_vm1, %v42_v12 }
  0x2f   :  { %561 = vmatprep.mubr.msk.bf16.mxu1 %vm595_vm0, %v594_v57  ;;  %546 = vmatpush3.bf16.msra.mxu1 %v384_v44 }
  0x30   :  { %547 = vmatprep.subr.bf16.mxu1 %v594_v57 }
  0x31   :  { %513 = vmatpush3.bf16.msra.mxu0 %v176_v15 }
  0x32   :  { %514 = vmatprep.subr.bf16.mxu0 %v185_v16 }
  0x33   :  { %548 = vmatpush3.bf16.msra.mxu1 %v385_v46 }
  0x34   :  { %549 = vmatprep.subr.bf16.mxu1 %v594_v57 }
  0x35   :  { %515 = vmatpush3.bf16.msra.mxu0 %v177_v21 }
  0x36   :  { %516 = vmatprep.subr.bf16.mxu0 %v186_v22 }
  0x37   :  { %550 = vmatpush3.bf16.msra.mxu1 %v386_v49 }
  0x38   :  { %551 = vmatprep.subr.bf16.mxu1 %v594_v57 }
  0x39   :  { %517 = vmatpush3.bf16.msra.mxu0 %v178_v27 }
  0x3a   :  { %518 = vmatprep.subr.bf16.mxu0 %v187_v28 }
  0x3b   :  { %552 = vmatpush3.bf16.msra.mxu1 %v387_v52 }
  0x3c   :  { %553 = vmatprep.subr.bf16.mxu1 %v594_v57 }
  0x3d   :  { %519 = vmatpush3.bf16.msra.mxu0 %v179_v33 }
  0x3e   :  { %520 = vmatprep.subr.bf16.mxu0 %v188_v34 }
  0x3f   :  { %554 = vmatpush3.bf16.msra.mxu1 %v388_v55 }
  0x40   :  { %555 = vmatprep.subr.bf16.mxu1 %v594_v57 }
  0x41   :  { %521 = vmatpush3.bf16.msra.mxu0 %v180_v37 }
  0x43   :  { %556 = vmatpush3.bf16.msra.mxu1 %v389_v59 }
  0x44   :  { %316 = vmatmul.mubr.bf16.vlgmr.msra.gmra.mrb[4].mxu0 %v40_v40  ;;  %557 = vmatprep.subr.bf16.mxu1 %v594_v57 }
  0x47   :  { %558 = vmatpush3.bf16.msra.mxu1 %v390_v62 }
  0x48   :  { %559 = vmatprep.subr.bf16.mxu1 %v594_v57 }
  0x4b   :  { %560 = vmatpush3.bf16.msra.mxu1 %v391_v1 }
  0xf7   :  { %v478_v2 = vpop.f32.mrb[0].mxu0 }
  0xf8   :  { %v479_v4 = vpop.f32.mrb[1].mxu0 }
  0xf9   :  { %v480_v5 = vadd.f32 %v479_v4, %v478_v2  ;;  %v481_v6 = vpop.f32.mrb[2].mxu0  ;;  %v500_v7 = vpop.f32.mrb[0].mxu1 }
  0xfa   :  { %v482_v57 = vpop.f32.mrb[3].mxu0  ;;  %v501_v8 = vpop.f32.mrb[1].mxu1 }
  0xfb   :  { %v236_v9 = vadd.f32 %v480_v5, %v459_v3  ;;  %v483_v10 = vadd.f32 %v482_v57, %v481_v6  ;;  %v502_v11 = vadd.f32 %v501_v8, %v500_v7  ;;  %v503_v12 = vpop.f32.mrb[2].mxu1 }
  0xfc   :  { %v504_v13 = vpop.f32.mrb[3].mxu1 }
  0xfd   :  { %v239_v14 = vadd.f32 %v483_v10, %v459_v3  ;;  %v277_v15 = vadd.f32 %v502_v11, %v236_v9  ;;  %v505_v16 = vadd.f32 %v504_v13, %v503_v12 }
  0xff   :  { %v280_v17 = vadd.f32 %v505_v16, %v239_v14 }
 0x101   :  { %v358_v18 = vpop.f32.mrb[4].mxu1 }
 0x102   :  { %v543_v19 = vpop.f32.mrb[5].mxu1 }
 0x103   :  { %v361_v20 = vpop.f32.mrb[6].mxu1 }
 0x104   :  { %v544_v21 = vpop.f32.mrb[7].mxu1 }
 0x117   :  { %v522_v22 = vpop.f32.mrb[4].mxu0 }
 0x118   :  { %v523_v23 = vpop.f32.mrb[5].mxu0 }
 0x119   :  { %v524_v24 = vadd.f32 %v523_v23, %v522_v22  ;;  %v525_v25 = vpop.f32.mrb[6].mxu0 }
 0x11a   :  { %v526_v26 = vpop.f32.mrb[7].mxu0 }
 0x11b   :  { %v318_v27 = vadd.f32 %v524_v24, %v277_v15  ;;  %v527_v28 = vadd.f32 %v526_v26, %v525_v25 }
 0x11d   :  { %v359_v29 = vadd.f32 %v358_v18, %v318_v27  ;;  %v321_v30 = vadd.f32 %v527_v28, %v280_v17 }
 0x11f   :  { %v362_v31 = vadd.f32 %v361_v20, %v321_v30  ;;  %v365_v32 = vmax.f32 %v359_v29, 0.0 }
 0x121   :  { %v366_v33 = vmax.f32 %v362_v31, 0.0 }
 0x123   :  { %v367_v34 = vpack.c.bf16 %v366_v33, %v365_v32 }
 0x125   :  { %562 = vmatmul.mubr.bf16.vlgmr.msra.gmra.mrb[8].mxu1 %v367_v34 }
 0x1f8   :  { %v433_v36 = vpop.f32.mrb[8].mxu1 }
 0x1f9   :  { %v434_v37 = vadd.f32 %v461_v35, %v433_v36  ;;  %v563_v38 = vpop.f32.mrb[9].mxu1 }
 0x1fa   :  { %v436_v39 = vpop.f32.mrb[10].mxu1 }
 0x1fb   :  { %441 = vst.msk [vmem:[#allocation2] sm:$0xff] %vm440_vm2, %v434_v37  ;;  %v437_v40 = vadd.f32 %v461_v35, %v436_v39  ;;  %v564_v41 = vpop.f32.mrb[11].mxu1 }
 0x1fd   :  { %442 = vst.msk [vmem:[#allocation2 + $0x8] sm:$0xff] %vm440_vm2, %v437_v40 }
 0x1fe   :  { %447 = vsyncadd [#allocation3], 128  ;;  %s596_s23 = smov [#allocation2]  }
 0x1ff   :  { %s448_s0 = sshll.u32 %s596_s23, 4  ;;  %s449_s0 = int_to_ptr.vmem [resolvable:$true] %s448_s0 }
 0x200   :  { %s570_s24 = scalar_lea.vmem %s449_s0, 128  ;;  %s574_s25 = scalar_lea.vmem %s449_s0, 256 }
 0x201   :  { %p571_p0 = scmp.ne.s32.totalorder %s449_s0, %s570_s24  ;;  %p575_p1 = scmp.lt.s32.totalorder %s449_s0, %s449_s0 }
 0x202   :  { %p576_p2 = scmp.lt.s32.totalorder %s574_s25, %s570_s24 }
 0x204   :  { %p577_p3 = por %p576_p2, %p575_p1 }
 0x206   :  { %p578_p4 = pnand %p577_p3, %p571_p0 }
 0x208   :  { %581 = shalt.err (!%p578_p4)
}
 0x209   :  { %s582_s27 = scalar_lea.hbm %s1049_s5, 128 }
 0x20a   :  { %p583_p5 = scmp.ne.s32.totalorder %s1049_s5, %s582_s27  ;;  %p586_p6 = scmp.lt.u32.totalorder %s582_s27, %s1049_s5 }
 0x20c   :  { %p588_p7 = pnand %p586_p6, %p583_p5 }
 0x20e   :  { %591 = shalt.err (!%p588_p7)
}
 0x20f   :  { %s597_s7 = smov 128   ;;  %s598_s8 = smov 8  }
 0x210   :  { %454 = dma.vmem_to_hbm [thread:$0]  %s449_s0, 128, %s1049_s5, [#allocation3], %s597_s7, %s597_s7, %s598_s8  }
 0x211   :  { %592 = dma.done.wait [#allocation3], 256  }
 0x212   :  { %593 = vsyncadd [#allocation3], 4294967040 }
 0x213   :  { %458 = vsyncpa [#allocation3], 1 }

</bundles_post_ra>
